<compile_context>
chip_gen: v5e
topology: v5e:2x2
jax: 0.10.0
libtpu: 0.0.40
codegen_flags: <defaults>
</compile_context>

<pallas_src>
import functools

import jax
import jax.numpy as jnp
from jax.experimental import pallas as pl
from jax.experimental.pallas import tpu as pltpu


def _on_tpu():
    try:
        return jax.devices()[0].platform == "tpu"
    except Exception:
        return False


def _tpu_vmem_bytes():
    try:
        return int(pltpu.get_tpu_info().vmem_capacity_bytes)
    except Exception:
        return 128 * 1024 * 1024          # v5e/v6e default assumption


def _plan_tiles(rows, d_model, dtype):
    """Pick (tile_rows, n_tiles, vmem_limit_bytes) for the row grid.

    Tile target: ~8 MiB on 128 MiB-VMEM chips (v5e/v6e), ~4 MiB on 64 MiB
    chips (v7x).  Budget: 2x(in+out tile) double-buffered plus ~4 tile-sized
    f32 temporaries stays well under vmem_limit = min(3/4 * phys, 96 MiB).
    """
    itemsize = jnp.dtype(dtype).itemsize
    align = {4: 8, 2: 16, 1: 32}.get(itemsize, 8)    # sublane packing
    phys = _tpu_vmem_bytes()
    vmem_limit = min((3 * phys) // 4, 96 * 1024 * 1024)
    target_tile_bytes = (8 * 1024 * 1024 if phys >= 128 * 1024 * 1024
                         else 4 * 1024 * 1024)

    tr = target_tile_bytes // max(1, d_model * itemsize)
    tr = max(align, (tr // align) * align)
    if tr >= rows:
        return rows, 1, vmem_limit

    n = -(-rows // tr)
    # Prefer an even tile count so both v7x TensorCores get equal work.
    if n > 1 and n % 2 == 1:
        tr2 = -(-rows // (n + 1))
        tr2 = -(-tr2 // align) * align
        if 0 < tr2 < tr and (-(-rows // tr2)) % 2 == 0:
            tr = tr2
            n = -(-rows // tr)
    return tr, n, vmem_limit


def _sublayer_kernel(seed_ref, x_ref, alpha_ref, beta_ref, o_ref, *,
                     eps, keep_threshold, d_model, tile_rows,
                     apply_dropout, use_hw_prng):
    # ---- layer norm over the last (lane) axis ----
    x = x_ref[...].astype(jnp.float32)                    # (tile_rows, d_model)
    mean = jnp.mean(x, axis=-1, keepdims=True)            # (tile_rows, 1)
    diff = x - mean
    denom = max(d_model - 1, 1)                           # Bessel (torch.std default)
    var = jnp.sum(diff * diff, axis=-1, keepdims=True) * jnp.float32(1.0 / denom)
    std = jnp.sqrt(var)                                   # (tile_rows, 1)
    inv = pl.reciprocal(std + jnp.float32(eps), approx=True)  # per-row, EUP slot
    alpha = alpha_ref[...].astype(jnp.float32)            # (1, d_model)  (pre-scaled)
    beta = beta_ref[...].astype(jnp.float32)              # (1, d_model)  (pre-scaled)
    y = diff * inv * alpha + beta                         # broadcast VPU ops

    if apply_dropout:
        if use_hw_prng:
            # Hardware PRNG: near-zero VALU cost; mask depends on tiling.
            pltpu.prng_seed(seed_ref[0], pl.program_id(0))
            raw = pltpu.prng_random_bits(y.shape)
            bits = raw if raw.dtype == jnp.uint32 else pltpu.bitcast(raw, jnp.uint32)
        else:
            # Counter-hash fallback (non-TPU / interpret): tiling-independent.
            row0 = jnp.uint32(pl.program_id(0) * tile_rows)
            r = jax.lax.broadcasted_iota(jnp.uint32, y.shape, 0)
            c = jax.lax.broadcasted_iota(jnp.uint32, y.shape, 1)
            h = (row0 + r) * jnp.uint32(d_model) + c
            h = h ^ (seed_ref[0].astype(jnp.uint32) * jnp.uint32(0x9E3779B9))
            h = h ^ (h >> 16)
            h = h * jnp.uint32(0x7FEB352D)
            h = h ^ (h >> 15)
            h = h * jnp.uint32(0x846CA68B)
            h = h ^ (h >> 16)
            bits = h
        # Compare top 31 bits as signed int32 (avoids unsigned-compare path).
        h31 = (bits >> 1).astype(jnp.int32)
        keep = h31 < jnp.int32(keep_threshold)
        # 1/keep_prob already folded into alpha/beta by the wrapper.
        y = jnp.where(keep, y, jnp.float32(0.0))

    o_ref[...] = y.astype(o_ref.dtype)


def sublayer_forward(x, alpha, beta, seed, *, dropout_p=0.5, eps=1e-6,
                     training=True):
    """Pallas implementation of SubLayer.forward.

    x:     (..., d_model)       (d_model should be a multiple of 128 for
                                 lane-dense stores in production)
    alpha: (d_model,)
    beta:  (d_model,)
    seed:  python int / int32 scalar driving the dropout mask
    """
    d_model = x.shape[-1]
    lead = x.shape[:-1]
    x2 = x.reshape(-1, d_model)
    rows = x2.shape[0]

    keep_prob = 1.0 - float(dropout_p)
    apply_dropout = bool(training) and dropout_p > 0.0

    alpha2 = alpha.reshape(1, d_model).astype(jnp.float32)
    beta2 = beta.reshape(1, d_model).astype(jnp.float32)
    if apply_dropout:
        # Fold inverted-dropout scaling into the affine params
        # (saves one full-tile vmul per element inside the kernel).
        alpha2 = alpha2 * jnp.float32(1.0 / keep_prob)
        beta2 = beta2 * jnp.float32(1.0 / keep_prob)

    seed_arr = jnp.asarray([seed], dtype=jnp.int32)
    keep_threshold = min(int(keep_prob * (2 ** 31)), 2 ** 31 - 1)

    tile_rows, n_tiles, vmem_limit = _plan_tiles(rows, d_model, x.dtype)
    grid = (n_tiles,)

    kernel = functools.partial(
        _sublayer_kernel,
        eps=eps,
        keep_threshold=keep_threshold,
        d_model=d_model,
        tile_rows=tile_rows,
        apply_dropout=apply_dropout,
        use_hw_prng=_on_tpu(),
    )

    # Memory-bound: ~2 passes over x (read + write) plus the tiny params.
    itemsize = jnp.dtype(x.dtype).itemsize
    bytes_accessed = 2 * rows * d_model * itemsize + 2 * d_model * 4 + 4
    cost = pl.CostEstimate(
        flops=8 * rows * d_model,
        transcendentals=2 * rows,
        bytes_accessed=bytes_accessed,
    )

    out = pl.pallas_call(
        kernel,
        out_shape=jax.ShapeDtypeStruct((rows, d_model), x.dtype),
        grid_spec=pltpu.PrefetchScalarGridSpec(
            num_scalar_prefetch=1,
            grid=grid,
            in_specs=[
                pl.BlockSpec((tile_rows, d_model), lambda i, s: (i, 0)),
                pl.BlockSpec((1, d_model), lambda i, s: (0, 0)),
                pl.BlockSpec((1, d_model), lambda i, s: (0, 0)),
            ],
            out_specs=pl.BlockSpec((tile_rows, d_model), lambda i, s: (i, 0)),
        ),
        compiler_params=pltpu.CompilerParams(
            dimension_semantics=("parallel",),     # row tiles are independent
            vmem_limit_bytes=vmem_limit,
        ),
        cost_estimate=cost,
    )(seed_arr, x2, alpha2, beta2)

    return out.reshape(*lead, d_model)


if __name__ == "__main__":
    batch, seq, d_model = 2, 8, 128     # lane-dense last dim (multiple of 128)
    dropout_p = 0.5
    eps = 1e-6

    key = jax.random.PRNGKey(0)
    x = jax.random.normal(key, (batch, seq, d_model), dtype=jnp.float32)

    # Parameters as in nn.Parameter(torch.ones(d)), nn.Parameter(torch.zeros(d)).
    alpha = jnp.ones((d_model,), dtype=jnp.float32)
    beta = jnp.zeros((d_model,), dtype=jnp.float32)

    # Pure-JAX reference of the LayerNorm part (unbiased std, eps on std).
    mean = jnp.mean(x, axis=-1, keepdims=True)
    var = jnp.sum((x - mean) ** 2, axis=-1, keepdims=True) / (d_model - 1)
    ref = alpha * (x - mean) / (jnp.sqrt(var) + eps) + beta

    # --- eval mode (no dropout): compare against reference ---
    out_eval = sublayer_forward(x, alpha, beta, seed=0, dropout_p=dropout_p,
                                eps=eps, training=False)
    out_eval = jax.block_until_ready(out_eval)
    assert out_eval.shape == x.shape
    # Tolerance loosened slightly for the approx (EUP) reciprocal.
    assert jnp.allclose(out_eval, ref, atol=5e-3, rtol=5e-3), "eval mismatch"

    # --- training mode: kept values are ref / keep_prob, some values dropped ---
    out_train = sublayer_forward(x, alpha, beta, seed=123, dropout_p=dropout_p,
                                 eps=eps, training=True)
    out_train = jax.block_until_ready(out_train)
    kept = out_train != 0.0
    n_kept = int(jnp.sum(kept))
    n_total = out_train.size
    assert 0 < n_kept < n_total, "dropout mask degenerate"
    assert jnp.allclose(out_train[kept], (ref / (1.0 - dropout_p))[kept],
                        atol=1e-2, rtol=5e-3), "train mismatch"

    print("KERNEL_OK")
</pallas_src>

<mosaic_0001>
module attributes {stable_mosaic.version = 11 : i64} {
  func.func @_sublayer_kernel(%arg0: i32, %arg1: memref<1xi32, #tpu.memory_space<smem>>, %arg2: memref<16x128xf32, #tpu.memory_space<vmem>>, %arg3: memref<1x128xf32, #tpu.memory_space<vmem>>, %arg4: memref<1x128xf32, #tpu.memory_space<vmem>>, %arg5: memref<16x128xf32, #tpu.memory_space<vmem>>) attributes {dimension_semantics = [#tpu.dimension_semantics<parallel>], iteration_bounds = array<i64: 1>, scalar_prefetch = 1 : i64, scratch_operands = 0 : i64, tpu.core_type = #tpu.core_type<tc>, window_params = [{transform_indices = @transform_0, window_bounds = array<i64: 16, 128>}, {pipeline_mode = #tpu.pipeline_mode<synchronous>, transform_indices = @transform_1, window_bounds = array<i64: 1, 128>}, {pipeline_mode = #tpu.pipeline_mode<synchronous>, transform_indices = @transform_2, window_bounds = array<i64: 1, 128>}, {transform_indices = @transform_3, window_bounds = array<i64: 16, 128>}]} {
    %c0 = arith.constant 0 : index
    %c0_0 = arith.constant 0 : index
    %0 = vector.load %arg2[%c0, %c0_0] : memref<16x128xf32, #tpu.memory_space<vmem>>, vector<16x128xf32>
    %cst = arith.constant dense<0.000000e+00> : vector<16xf32>
    %1 = vector.multi_reduction <add>, %0, %cst [1] : vector<16x128xf32> to vector<16xf32>
    %2 = vector.shape_cast %1 : vector<16xf32> to vector<16x1xf32>
    %cst_1 = arith.constant 1.280000e+02 : f32
    %3 = vector.broadcast %cst_1 : f32 to vector<16x1xf32>
    %4 = arith.divf %2, %3 : vector<16x1xf32>
    %5 = vector.broadcast %4 : vector<16x1xf32> to vector<16x128xf32>
    %6 = arith.subf %0, %5 : vector<16x128xf32>
    %7 = arith.mulf %6, %6 : vector<16x128xf32>
    %cst_2 = arith.constant dense<0.000000e+00> : vector<16xf32>
    %8 = vector.multi_reduction <add>, %7, %cst_2 [1] : vector<16x128xf32> to vector<16xf32>
    %9 = vector.shape_cast %8 : vector<16xf32> to vector<16x1xf32>
    %cst_3 = arith.constant 0.00787401571 : f32
    %10 = vector.broadcast %cst_3 : f32 to vector<16x1xf32>
    %11 = arith.mulf %9, %10 : vector<16x1xf32>
    %12 = math.sqrt %11 : vector<16x1xf32>
    %cst_4 = arith.constant 9.99999997E-7 : f32
    %13 = vector.broadcast %cst_4 : f32 to vector<16x1xf32>
    %14 = arith.addf %12, %13 : vector<16x1xf32>
    %15 = tpu.reciprocal %14 {approx = true} : vector<16x1xf32> -> vector<16x1xf32>
    %c0_5 = arith.constant 0 : index
    %c0_6 = arith.constant 0 : index
    %16 = vector.load %arg3[%c0_5, %c0_6] : memref<1x128xf32, #tpu.memory_space<vmem>>, vector<1x128xf32>
    %c0_7 = arith.constant 0 : index
    %c0_8 = arith.constant 0 : index
    %17 = vector.load %arg4[%c0_7, %c0_8] : memref<1x128xf32, #tpu.memory_space<vmem>>, vector<1x128xf32>
    %18 = vector.broadcast %15 : vector<16x1xf32> to vector<16x128xf32>
    %19 = arith.mulf %6, %18 : vector<16x128xf32>
    %20 = vector.broadcast %16 : vector<1x128xf32> to vector<16x128xf32>
    %21 = arith.mulf %19, %20 : vector<16x128xf32>
    %22 = vector.broadcast %17 : vector<1x128xf32> to vector<16x128xf32>
    %23 = arith.addf %21, %22 : vector<16x128xf32>
    %c0_9 = arith.constant 0 : index
    %c0_10 = arith.constant 0 : index
    %24 = vector.load %arg5[%c0_9, %c0_10] : memref<16x128xf32, #tpu.memory_space<vmem>>, vector<16x128xf32>
    tpu.vector_store %arg5[%c0_9, %c0_10], %23 {strides = array<i32>} : memref<16x128xf32, #tpu.memory_space<vmem>>, vector<16x128xf32>,
    return
  }
  func.func @transform_0(%arg0: i32, %arg1: memref<1xi32, #tpu.memory_space<smem>>) -> (i32, i32) {
    %c0_i32 = arith.constant 0 : i32
    %c0_i32_0 = arith.constant 0 : i32
    return %arg0, %c0_i32 : i32, i32
  }
  func.func @transform_1(%arg0: i32, %arg1: memref<1xi32, #tpu.memory_space<smem>>) -> (i32, i32) {
    %c0_i32 = arith.constant 0 : i32
    %c0_i32_0 = arith.constant 0 : i32
    %c0_i32_1 = arith.constant 0 : i32
    return %c0_i32, %c0_i32_0 : i32, i32
  }
  func.func @transform_2(%arg0: i32, %arg1: memref<1xi32, #tpu.memory_space<smem>>) -> (i32, i32) {
    %c0_i32 = arith.constant 0 : i32
    %c0_i32_0 = arith.constant 0 : i32
    %c0_i32_1 = arith.constant 0 : i32
    return %c0_i32, %c0_i32_0 : i32, i32
  }
  func.func @transform_3(%arg0: i32, %arg1: memref<1xi32, #tpu.memory_space<smem>>) -> (i32, i32) {
    %c0_i32 = arith.constant 0 : i32
    %c0_i32_0 = arith.constant 0 : i32
    return %arg0, %c0_i32 : i32, i32
  }
}

</mosaic_0001>

<bundles_post_ra>
// kernel: tpu_custom_call.1
= control target key start
LH: loop header
LB: loop body
LE: loop exit
PB: predicated region body
PF: predicated region fallthrough
CT: control target
= control target key end

     0   :  { %10 = vsyncpa [#allocation5], 0  ;;  %s238_s0 = inlined_call_operand.<no memory space> [shape: s32[1], index: 0, kind: input, shape index: {}]   ;;  %s239_s1 = inlined_call_operand.hbm [shape: f32[16,128], index: 1, kind: input, shape index: {}]   ;;  %s240_s2 = inlined_call_operand.vmem [shape: f32[1,128], index: 2, kind: input, shape index: {}]   ;;  %s241_s3 = inlined_call_operand.vmem [shape: f32[1,128], index: 3, kind: input, shape index: {}]   ;;  %s242_s4 = inlined_call_operand.hbm [shape: f32[16,128], index: 4, kind: output, shape index: {}]  }
   0x1   :  { %11 = vsyncpa [#allocation6], 0  ;;  %s16_s17 = sshll.u32 %s239_s1, 4  ;;  %s190_s0 = smov [#allocation4]   ;;  %s17_s17 = int_to_ptr.hbm [resolvable:$true] %s16_s17 }
   0x2   :  { %s18_s18 = sshll.u32 %s190_s0, 4  ;;  %s191_s19 = smov 128   ;;  %s19_s18 = int_to_ptr.vmem [resolvable:$true] %s18_s18 }
   0x3   :  { %s192_s20 = smov 8  }
   0x4   :  { %24 = dma.hbm_to_vmem [thread:$0]  %s17_s17, 256, %s19_s18, [#allocation5], %s191_s19, %s191_s19, %s192_s20  }
   0x5   :  { %186 = dma.done.wait [#allocation5], 256  }
   0x6   :  { %187 = vsyncadd [#allocation5], 4294967040  ;;  %v33_v0 = vld [vmem:[#allocation4] sm:$0xff]  ;;  %v34_v1 = vld [vmem:[#allocation4 + $0x8] sm:$0xff]  ;;  %v193_v2 = vmov 128.0   ;;  %s194_s24 = smov [#allocation7]  }
   0x7   :  { %35 = vadd.xlane.f32.xlu0 %v33_v0  ;;  %128 = vrcp.f32 %v193_v2  ;;  %v126_v42 = vld [vmem:[%s240_s2] ss:$0 sm:$0xff]  ;;  %s106_s25 = sshll.u32 %s194_s24, 4  ;;  %s108_s28 = sshll.u32 %s242_s4, 4  ;;  %s107_s25 = int_to_ptr.vmem [resolvable:$true] %s106_s25  ;;  %s109_s28 = int_to_ptr.hbm [resolvable:$true] %s108_s28 }
   0x8   :  { %v127_v46 = vld [vmem:[%s241_s3] ss:$0 sm:$0xff] }
   0xd   :  { %v129_v3 = vpop.eup %128 }
   0xe   :  { %v40_v4 = vmul.f32 128.0, %v129_v3  ;;  %vm44_vm0 = vweird.f32 %v129_v3 }
   0xf   :  { %37 = vadd.xlane.f32.xlu0 %v34_v1 }
  0x10   :  { %v41_v5 = vsub.f32 1.0, %v40_v4 }
  0x12   :  { %v42_v6 = vmul.f32 %v129_v3, %v41_v5 }
  0x14   :  { %v43_v7 = vadd.f32 %v129_v3, %v42_v6 }
  0x16   :  { %v45_v8 = vsel %vm44_vm0, %v129_v3, %v43_v7 }
  0x7a   :  { %v36_v9 = vpop.xlane.xlu0 %35 }
  0x7b   :  { %v46_v10 = vmul.f32 %v45_v8, %v36_v9 }
  0x7d   :  { %v48_v11 = vsub.f32 %v33_v0, %v46_v10 }
  0x7f   :  { %v50_v12 = vmul.f32 %v48_v11, %v48_v11 }
  0x81   :  { %52 = vadd.xlane.f32.xlu1 %v50_v12 }
  0x82   :  { %v38_v13 = vpop.xlane.xlu0 %37 }
  0x83   :  { %v47_v14 = vmul.f32 %v45_v8, %v38_v13 }
  0x85   :  { %v49_v15 = vsub.f32 %v34_v1, %v47_v14 }
  0x87   :  { %v51_v16 = vmul.f32 %v49_v15, %v49_v15 }
  0x89   :  { %54 = vadd.xlane.f32.xlu1 %v51_v16 }
  0xf4   :  { %v53_v17 = vpop.xlane.xlu1 %52 }
  0xf5   :  { %v56_v18 = vmul.f32 0.007874016, %v53_v17 }
  0xf7   :  { %130 = vrsqrt.f32 %v56_v18  ;;  %vm65_vm1 = vcmp.eq.f32.partialorder %v56_v18, inf  ;;  %v68_v31 = vand.u32 2147483648, %v56_v18  ;;  %vm67_vm2 = vcmp.eq.f32.partialorder %v56_v18, 0.0 }
  0xfc   :  { %v55_v19 = vpop.xlane.xlu1 %54 }
  0xfd   :  { %v131_v20 = vpop.eup %130  ;;  %v57_v21 = vmul.f32 0.007874016, %v55_v19 }
  0xfe   :  { %v59_v22 = vmul.f32 %v131_v20, %v56_v18 }
  0xff   :  { %132 = vrsqrt.f32 %v57_v21  ;;  %vm77_vm3 = vcmp.eq.f32.partialorder %v57_v21, inf  ;;  %v80_v39 = vand.u32 2147483648, %v57_v21  ;;  %vm79_vm4 = vcmp.eq.f32.partialorder %v57_v21, 0.0 }
 0x100   :  { %v60_v23 = vmul.f32 %v131_v20, %v59_v22 }
 0x102   :  { %v61_v24 = vmul.f32 0.5, %v60_v23 }
 0x104   :  { %v62_v25 = vsub.f32 1.5, %v61_v24 }
 0x105   :  { %v133_v26 = vpop.eup %132 }
 0x106   :  { %v63_v27 = vmul.f32 %v131_v20, %v62_v25  ;;  %v71_v28 = vmul.f32 %v133_v26, %v57_v21 }
 0x108   :  { %v64_v29 = vmul.f32 %v63_v27, %v56_v18  ;;  %v72_v30 = vmul.f32 %v133_v26, %v71_v28 }
 0x10a   :  { %v73_v32 = vmul.f32 0.5, %v72_v30  ;;  %v66_v33 = vsel %vm65_vm1, %v56_v18, %v64_v29 }
 0x10b   :  { %v69_v34 = vsel %vm67_vm2, %v68_v31, %v66_v33 }
 0x10c   :  { %v74_v35 = vsub.f32 1.5, %v73_v32  ;;  %v82_v36 = vadd.f32 1e-06, %v69_v34 }
 0x10e   :  { %v75_v37 = vmul.f32 %v133_v26, %v74_v35  ;;  %134 = vrcp.f32 %v82_v36 }
 0x110   :  { %v76_v38 = vmul.f32 %v75_v37, %v57_v21 }
 0x112   :  { %v78_v40 = vsel %vm77_vm3, %v57_v21, %v76_v38 }
 0x113   :  { %v81_v41 = vsel %vm79_vm4, %v80_v39, %v78_v40 }
 0x114   :  { %v135_v43 = vpop.eup %134  ;;  %v83_v44 = vadd.f32 1e-06, %v81_v41 }
 0x115   :  { %v88_v45 = vmul.f32 %v135_v43, %v48_v11 }
 0x116   :  { %136 = vrcp.f32 %v83_v44 }
 0x117   :  { %v93_v47 = vmul.f32 %v126_v42, %v88_v45 }
 0x119   :  { %v98_v48 = vadd.f32 %v127_v46, %v93_v47 }
 0x11b   :  { %100 = vst [vmem:[#allocation7] sm:$0xff] %v98_v48 }
 0x11c   :  { %v137_v49 = vpop.eup %136 }
 0x11d   :  { %v89_v50 = vmul.f32 %v137_v49, %v49_v15 }
 0x11f   :  { %v94_v51 = vmul.f32 %v126_v42, %v89_v50 }
 0x121   :  { %v99_v52 = vadd.f32 %v127_v46, %v94_v51 }
 0x123   :  { %101 = vst [vmem:[#allocation7 + $0x8] sm:$0xff] %v99_v52 }
 0x124   :  { %114 = dma.vmem_to_hbm [thread:$0]  %s107_s25, 256, %s109_s28, [#allocation6], %s191_s19, %s191_s19, %s192_s20  }
 0x125   :  { %188 = dma.done.wait [#allocation6], 256  }
 0x126   :  { %189 = vsyncadd [#allocation6], 4294967040 }
 0x127   :  { %119 = vsyncpa [#allocation5], 1 }
 0x128   :  { %120 = vsyncpa [#allocation6], 1 }

</bundles_post_ra>
